<compile_context>
chip_gen: v7x
topology: tpu7x:2x2x1
jax: 0.10.0
libtpu: 0.0.40
codegen_flags: <defaults>
</compile_context>

<pallas_src>
import jax
import jax.numpy as jnp
from jax.experimental import pallas as pl
from jax.experimental.pallas import tpu as pltpu


# ---------------------------------------------------------------------------
# Kernels
# ---------------------------------------------------------------------------
def _se_gate(pooled_f32, w1_ref, w2_ref):
    """pooled_f32: (TN, C) -> sigmoid gate (TN, C); all math in f32."""
    w1 = w1_ref[...].astype(jnp.float32)          # (Cr, C)   fc1 weight
    w2 = w2_ref[...].astype(jnp.float32)          # (C, Cr)   fc2 weight
    # fc1 (1x1 conv, no bias) + ReLU : (TN, C) x (Cr, C)^T -> (TN, Cr)
    h = jnp.einsum("nc,rc->nr", pooled_f32, w1,
                   preferred_element_type=jnp.float32)
    h = jnp.maximum(h, 0.0)
    # fc2 (1x1 conv, no bias) + sigmoid : (TN, Cr) x (C, Cr)^T -> (TN, C)
    s = jnp.einsum("nr,cr->nc", h, w2,
                   preferred_element_type=jnp.float32)
    return jax.nn.sigmoid(s)


def _se_kernel_nchw(x_ref, w1_ref, w2_ref, o_ref):
    # x_ref / o_ref: (TN, C, HW)  -- HW on the lane axis.
    x = x_ref[...].astype(jnp.float32)
    pooled = jnp.mean(x, axis=-1)                 # (TN, C) global avg pool
    s = _se_gate(pooled, w1_ref, w2_ref)          # (TN, C)
    o_ref[...] = (x * s[:, :, None]).astype(o_ref.dtype)


def _se_kernel_nhwc(x_ref, w1_ref, w2_ref, o_ref):
    # x_ref / o_ref: (TN, HW, C)  -- C on the lane axis (lane-dense stores).
    x = x_ref[...].astype(jnp.float32)
    pooled = jnp.mean(x, axis=1)                  # (TN, C) global avg pool
    s = _se_gate(pooled, w1_ref, w2_ref)          # (TN, C)
    o_ref[...] = (x * s[:, None, :]).astype(o_ref.dtype)


# ---------------------------------------------------------------------------
# Wrapper
# ---------------------------------------------------------------------------
def _pick_block_n(n, c, hw, dtype_bytes, target_block_bytes=6 << 20):
    """Largest divisor of `n` whose (TN, C, HW) slab is ~target_block_bytes,
    while keeping >= 2 grid steps so both v7x TensorCores get work."""
    per_image = max(1, c * hw * dtype_bytes)
    tn = max(1, min(n, target_block_bytes // per_image))
    if n >= 2:
        tn = min(tn, pl.cdiv(n, 2))
    while n % tn:
        tn -= 1
    return int(tn)


def se_module(x_nchw, w1, w2, *, block_n=None, vmem_limit_bytes=48 << 20):
    """SEModule forward.  x_nchw: (N, C, H, W); w1: (C//r, C); w2: (C, C//r)."""
    N, C, H, W = x_nchw.shape
    Cr = w1.shape[0]
    assert w1.shape == (Cr, C) and w2.shape == (C, Cr)
    HW = H * W

    # Lane-dense layout heuristic: if HW would force masked partial stores but
    # C is 128-aligned, put C on the lane axis instead.
    channels_last = (HW % 128 != 0) and (C % 128 == 0)

    if block_n is None:
        block_n = _pick_block_n(N, C, HW, jnp.dtype(x_nchw.dtype).itemsize)
    grid = (N // block_n,)

    if channels_last:
        x = jnp.transpose(x_nchw.reshape(N, C, HW), (0, 2, 1))   # (N, HW, C)
        kernel = _se_kernel_nhwc
        block = (block_n, HW, C)
    else:
        x = x_nchw.reshape(N, C, HW)                             # (N, C, HW)
        kernel = _se_kernel_nchw
        block = (block_n, C, HW)

    # NOTE: if a single image slab ever exceeds the VMEM budget (huge C*HW,
    # e.g. early layers on v7x), tile HW with a (C, 1) scratch accumulator in
    # a two-pass scheme instead; not needed for typical SE shapes.
    out = pl.pallas_call(
        kernel,
        out_shape=jax.ShapeDtypeStruct(x.shape, x.dtype),
        grid_spec=pltpu.PrefetchScalarGridSpec(
            num_scalar_prefetch=0,
            grid=grid,
            in_specs=[
                pl.BlockSpec(block, lambda n: (n, 0, 0)),
                # Weight blocks have a constant index_map, so the pipeline
                # reuses them across grid steps without re-fetching.
                pl.BlockSpec((Cr, C), lambda n: (0, 0)),
                pl.BlockSpec((C, Cr), lambda n: (0, 0)),
            ],
            out_specs=pl.BlockSpec(block, lambda n: (n, 0, 0)),
        ),
        compiler_params=pltpu.CompilerParams(
            # Batch-block axis is embarrassingly parallel -> megacore sharding.
            dimension_semantics=("parallel",),
            # Above the 16 MiB (v5e) / 32 MiB (v6e) scoped defaults, below
            # v7x's 64 MiB physical VMEM.
            vmem_limit_bytes=vmem_limit_bytes,
        ),
    )(x, w1, w2)

    if channels_last:
        out = jnp.transpose(out, (0, 2, 1))
    return out.reshape(N, C, H, W)


# ---------------------------------------------------------------------------
# Pure-JAX reference
# ---------------------------------------------------------------------------
def se_module_ref(x_nchw, w1, w2):
    pooled = jnp.mean(x_nchw, axis=(2, 3))                    # (N, C)
    h = jnp.maximum(pooled @ w1.T, 0.0)                       # (N, C//r)
    s = jax.nn.sigmoid(h @ w2.T)                              # (N, C)
    return x_nchw * s[:, :, None, None]


if __name__ == "__main__":
    key = jax.random.PRNGKey(0)

    # (N, C, H, W, reduction, tol)
    cases = [
        (2, 4, 16, 16, 2, 1e-5),    # HW % 128 == 0 -> (N, C, HW) layout
        (4, 4, 16, 16, 2, 1e-5),    # exercises TN=2 batch blocking
        (2, 128, 7, 7, 16, 2e-3),   # HW=49, C=128 -> lane-dense (N, HW, C) layout
    ]
    keys = jax.random.split(key, len(cases))
    for case_key, (N, C, H, W, r, tol) in zip(keys, cases):
        Cr = C // r
        kx, k1, k2 = jax.random.split(case_key, 3)
        x = jax.random.normal(kx, (N, C, H, W), dtype=jnp.float32)
        w1 = jax.random.normal(k1, (Cr, C), dtype=jnp.float32) * 0.5  # fc1
        w2 = jax.random.normal(k2, (C, Cr), dtype=jnp.float32) * 0.5  # fc2

        out = jax.block_until_ready(se_module(x, w1, w2))
        ref = se_module_ref(x, w1, w2)
        assert out.shape == (N, C, H, W)
        # Looser tol on the C=128 case allows for f32-matmul pass-count
        # differences between Mosaic (in-kernel MXU) and XLA (reference).
        assert jnp.allclose(out, ref, atol=tol, rtol=tol), (N, C, H, W)

    print("KERNEL_OK")
</pallas_src>

<mosaic_0001>
module attributes {stable_mosaic.version = 11 : i64} {
  func.func @_se_kernel_nchw(%arg0: i32, %arg1: memref<1x4x256xf32, #tpu.memory_space<vmem>>, %arg2: memref<2x4xf32, #tpu.memory_space<vmem>>, %arg3: memref<4x2xf32, #tpu.memory_space<vmem>>, %arg4: memref<1x4x256xf32, #tpu.memory_space<vmem>>) attributes {dimension_semantics = [#tpu.dimension_semantics<parallel>], iteration_bounds = array<i64: 2>, scalar_prefetch = 0 : i64, scratch_operands = 0 : i64, tpu.core_type = #tpu.core_type<tc>, window_params = [{transform_indices = @transform_0, window_bounds = array<i64: 1, 4, 256>}, {pipeline_mode = #tpu.pipeline_mode<synchronous>, transform_indices = @transform_1, window_bounds = array<i64: 2, 4>}, {pipeline_mode = #tpu.pipeline_mode<synchronous>, transform_indices = @transform_2, window_bounds = array<i64: 4, 2>}, {transform_indices = @transform_3, window_bounds = array<i64: 1, 4, 256>}]} {
    %c0 = arith.constant 0 : index
    %c0_0 = arith.constant 0 : index
    %c0_1 = arith.constant 0 : index
    %0 = vector.load %arg1[%c0, %c0_0, %c0_1] : memref<1x4x256xf32, #tpu.memory_space<vmem>>, vector<1x4x256xf32>
    %cst = arith.constant dense<0.000000e+00> : vector<1x4xf32>
    %1 = vector.multi_reduction <add>, %0, %cst [2] : vector<1x4x256xf32> to vector<1x4xf32>
    %cst_2 = arith.constant 2.560000e+02 : f32
    %2 = vector.broadcast %cst_2 : f32 to vector<1x4xf32>
    %3 = arith.divf %1, %2 : vector<1x4xf32>
    %c0_3 = arith.constant 0 : index
    %c0_4 = arith.constant 0 : index
    %4 = vector.load %arg2[%c0_3, %c0_4] : memref<2x4xf32, #tpu.memory_space<vmem>>, vector<2x4xf32>
    %c0_5 = arith.constant 0 : index
    %c0_6 = arith.constant 0 : index
    %5 = vector.load %arg3[%c0_5, %c0_6] : memref<4x2xf32, #tpu.memory_space<vmem>>, vector<4x2xf32>
    "tpu.trace_start"() <{level = 10 : i32, message = "nc,rc->nr"}> : () -> ()
    %cst_7 = arith.constant dense<0.000000e+00> : vector<1x2xf32>
    %6 = tpu.matmul %3, %4, %cst_7 {dimension_numbers = #tpu.dot_dimension_numbers<[1], [1], [0], [0], [0, 0, 1, 0], [], []>} : vector<1x4xf32>, vector<2x4xf32>, vector<1x2xf32> -> vector<1x2xf32>
    "tpu.trace_stop"() : () -> ()
    %cst_8 = arith.constant 0.000000e+00 : f32
    %7 = vector.broadcast %cst_8 : f32 to vector<1x2xf32>
    %8 = arith.maximumf %6, %7 : vector<1x2xf32>
    "tpu.trace_start"() <{level = 10 : i32, message = "nr,cr->nc"}> : () -> ()
    %cst_9 = arith.constant dense<0.000000e+00> : vector<1x4xf32>
    %9 = tpu.matmul %8, %5, %cst_9 {dimension_numbers = #tpu.dot_dimension_numbers<[1], [1], [0], [0], [0, 0, 1, 0], [], []>} : vector<1x2xf32>, vector<4x2xf32>, vector<1x4xf32> -> vector<1x4xf32>
    "tpu.trace_stop"() : () -> ()
    %10 = arith.negf %9 : vector<1x4xf32>
    %11 = math.exp %10 : vector<1x4xf32>
    %cst_10 = arith.constant 1.000000e+00 : f32
    %12 = vector.broadcast %cst_10 : f32 to vector<1x4xf32>
    %13 = arith.addf %12, %11 : vector<1x4xf32>
    %14 = arith.divf %12, %13 : vector<1x4xf32>
    %15 = vector.shape_cast %14 : vector<1x4xf32> to vector<1x4x1xf32>
    %16 = vector.broadcast %15 : vector<1x4x1xf32> to vector<1x4x256xf32>
    %17 = arith.mulf %0, %16 : vector<1x4x256xf32>
    %c0_11 = arith.constant 0 : index
    %c0_12 = arith.constant 0 : index
    %c0_13 = arith.constant 0 : index
    %18 = vector.load %arg4[%c0_11, %c0_12, %c0_13] : memref<1x4x256xf32, #tpu.memory_space<vmem>>, vector<1x4x256xf32>
    tpu.vector_store %arg4[%c0_11, %c0_12, %c0_13], %17 {strides = array<i32>} : memref<1x4x256xf32, #tpu.memory_space<vmem>>, vector<1x4x256xf32>,
    return
  }
  func.func @transform_0(%arg0: i32) -> (i32, i32, i32) {
    %c0_i32 = arith.constant 0 : i32
    %c0_i32_0 = arith.constant 0 : i32
    %c0_i32_1 = arith.constant 0 : i32
    return %arg0, %c0_i32, %c0_i32_0 : i32, i32, i32
  }
  func.func @transform_1(%arg0: i32) -> (i32, i32) {
    %c0_i32 = arith.constant 0 : i32
    %c0_i32_0 = arith.constant 0 : i32
    %c0_i32_1 = arith.constant 0 : i32
    return %c0_i32, %c0_i32_0 : i32, i32
  }
  func.func @transform_2(%arg0: i32) -> (i32, i32) {
    %c0_i32 = arith.constant 0 : i32
    %c0_i32_0 = arith.constant 0 : i32
    %c0_i32_1 = arith.constant 0 : i32
    return %c0_i32, %c0_i32_0 : i32, i32
  }
  func.func @transform_3(%arg0: i32) -> (i32, i32, i32) {
    %c0_i32 = arith.constant 0 : i32
    %c0_i32_0 = arith.constant 0 : i32
    %c0_i32_1 = arith.constant 0 : i32
    return %arg0, %c0_i32, %c0_i32_0 : i32, i32, i32
  }
}

</mosaic_0001>

<bundles_post_ra>
// kernel: tpu_custom_call.1
= control target key start
LH: loop header
LB: loop body
LE: loop exit
PB: predicated region body
PF: predicated region fallthrough
CT: control target
= control target key end

     0   :  { %8 = vsyncpa [#allocation3], 0  ;;  %s854_s0 = inlined_call_operand.hbm [shape: f32[2,4,256], index: 0, kind: input, shape index: {}]   ;;  %s855_s1 = inlined_call_operand.vmem [shape: f32[2,4], index: 1, kind: input, shape index: {}]   ;;  %s856_s2 = inlined_call_operand.vmem [shape: f32[4,2], index: 2, kind: input, shape index: {}]   ;;  %s857_s3 = inlined_call_operand.hbm [shape: f32[2,4,256], index: 3, kind: output, shape index: {}]  }
   0x1   :  { %10 = vsyncpa [#allocation3 + $0x1], 0 }
   0x2   :  { %11 = vsyncpa [#allocation4], 0 }
   0x3   :  { %13 = vsyncpa [#allocation4 + $0x1], 0  ;;  %s683_s12 = smov 0   ;;  %s685_s13 = smov 0  }
   0x4   :  { %s687_s14 = smov 0   ;;  %s689_s15 = smov 0  }
   0x5 LB: > { %s704_s16 = sadd.s32 4294967295, %s656_s15   ;;  %s471_s17 = sadd.s32 4294967294, %s656_s15   ;;  %s656_s15 = sphi %s689_s15, %s872_s15   ;;  %s652_s14 = sphi %s687_s14, %s871_s14   ;;  %s648_s13 = sphi %s685_s13, %s870_s13   ;;  %s644_s12 = sphi %s683_s12, %s869_s12  }
   0x6   : > { %s708_s18 = sadd.s32 1, %s656_s15   ;;  %s26_s19 = sadd.s32 1, %s652_s14 }
   0x7   : > { %s23_s20 = ssub.s32 %s656_s15, %s708_s18  ;;  %p33_p0 = scmp.ne.s32.totalorder %s652_s14, %s648_s13 }
   0x8   : > { %p24_p1 = scmp.eq.s32.totalorder %s23_s20, 0  ;;  %p34_p2 = scmp.eq.s32.totalorder %s656_s15, 0 }
   0x9   : > { %p39_p3 = scmp.ne.s32.totalorder %s648_s13, %s644_s12  ;;  %p40_p4 = scmp.eq.s32.totalorder %s704_s16, 0 }
   0xa   : > { %s720_s21 = scalar_select %p24_p1, %s652_s14, %s26_s19  }
   0xb   : > { %p722_p5 = por %p34_p2, %p33_p0  ;;  %p726_p6 = por %p40_p4, %p39_p3 }
   0xc   : > { %p105_p7 = scmp.eq.s32.totalorder %s704_s16, 1  ;;  %p111_p8 = scmp.eq.s32.totalorder %s471_s17, 1 }
   0xd   : > { %p518_p10 = scmp.lt.s32.totalorder %s656_s15, 2  ;;  %s137_s26 = sand.u32 1, %s652_s14  }
   0xe   : > { %p733_p11 = por %p105_p7, %p33_p0  ;;  %p737_p12 = por %p111_p8, %p39_p3 }
   0xf   : > { %s490_s27 = sshll.u32 %s656_s15, 7  ;;  %s474_s28 = sshll.u32 %s137_s26, 3 }
  0x10   : > { %s861_s24 = scalar_select %p733_p11, 1, 0 }
  0x11   : > { %s862_s25 = scalar_select %p737_p12, 1, 0 }
  0x12   : > { %s746_s4 = scalar_lea.hbm %s854_s0, %s490_s27  ;;  %s141_s5 = scalar_lea.vmem [#allocation2], %s474_s28 }
  0x13   : > { %s149_s6 = sshll.u32 %s141_s5, 4  ;;  %p750_p13 = pnand %p518_p10, %p722_p5  ;;  %s754_s6 = int_to_ptr.vmem [resolvable:$true] %s149_s6 }
  0x14   : > { %s138_s8 = scalar_lea.sflag [#allocation3], %s137_s26  ;;  %s560_s9 = scalar_lea.hbm %s746_s4, 128 }
  0x15   : > { %p561_p2 = scmp.ne.s32.totalorder %s746_s4, %s560_s9  ;;  %p562_p3 = pneg %p750_p13 }
  0x16   : > { %s565_s17 = scalar_lea.hbm %s854_s0, 256  ;;  %p566_p5 = scmp.lt.u32.totalorder %s746_s4, %s854_s0 }
  0x17   : > { %p563_p4 = pnand %p562_p3, %p561_p2  ;;  %p567_p8 = scmp.lt.u32.totalorder %s565_s17, %s560_s9 }
  0x18   : > { %p569_p9 = scmp.lt.u32.totalorder %s560_s9, %s746_s4 }
  0x19   : > { %p564_p7 = pneg %p563_p4  ;;  %p568_p10 = por %p567_p8, %p566_p5 }
  0x1b   : > { %p570_p0 = por %p569_p9, %p568_p10 }
  0x1d   : > { %p571_p1 = pnand %p570_p0, %p564_p7 }
  0x1f   : > { %574 = shalt.err (!%p571_p1)
}
  0x20   : > { %s575_s22 = scalar_lea.vmem %s754_s6, 128  ;;  %s658_s26 = smov [#allocation2]  }
  0x21   : > { %p576_p2 = scmp.ne.s32.totalorder %s754_s6, %s575_s22  ;;  %s580_s27 = sshll.u32 %s658_s26, 4  ;;  %s581_s27 = int_to_ptr.vmem [resolvable:$false] %s580_s27 }
  0x22   : > { %s582_s28 = scalar_lea.vmem %s581_s27, 256  ;;  %p583_p11 = scmp.lt.s32.totalorder %s754_s6, %s581_s27 }
  0x23   : > { %p578_p4 = pnand %p576_p2, %p562_p3  ;;  %p584_p5 = scmp.lt.s32.totalorder %s582_s28, %s575_s22 }
  0x25   : > { %p579_p12 = pneg %p578_p4  ;;  %p585_p8 = por %p584_p5, %p583_p11 }
  0x27   : > { %p586_p9 = pnand %p585_p8, %p579_p12 }
  0x29   : > { %589 = shalt.err (!%p586_p9)
}
  0x2a   : > { %513 = dma.hbm_to_vmem [thread:$0]  (!%p750_p13), %s746_s4, 128, %s754_s6, %s138_s8  }
  0x2b   : > { %p864_p0 = scmp.lt.s32.totalorder %s656_s15, 3  ;;  %p865_p1 = scmp.ge.s32.totalorder %s656_s15, 1 }
  0x2d   : > { %p155_p3 = pnand %p865_p1, %p864_p0 }
  0x2e   : > { %s788_s29 = sand.u32 (!%p155_p3), 1, %s648_s13  }
  0x2f   : > { %158 = sbr.rel (%p155_p3) target bundleno = 794 (0x31a), region = 32  ;;  %s478_s30 = sshll.u32 (!%p155_p3), %s788_s29, 3 }
  0x30   : > { %s161_s5 = scalar_lea.sflag (!%p155_p3), [#allocation3], %s788_s29  ;;  %s164_s7 = scalar_lea.vmem (!%p155_p3), [#allocation2], %s478_s30 }
  0x36   : > { %635 = dma.done.wait (%p726_p6), %s161_s5, 128  }
  0x37   : > { %637 = vsyncadd (%p726_p6), %s161_s5, 4294967168  ;;  %vm191_vm0 = vcmask 1043456   ;;  %v187_v0 = vld [vmem:[%s164_s7] sm:$0xff]  ;;  %v659_v5 = vmov 0.0   ;;  %vm208_vm1 = vcmask 31744   ;;  %vm660_vm2 = vmmov 0  }
  0x38   : > { %v189_v1 = vcombine.high %v187_v0, %v187_v0  ;;  %v192_v2 = vsel %vm191_vm0, %v187_v0, 0.0  ;;  %496 = vmatprep.subr.mxu0 %v659_v5  ;;  %v199_v6 = vld [vmem:[%s855_s1] sm:$0x3]  ;;  %501 = vmatprep.subr.mxu1 %v659_v5  ;;  %v202_v7 = vlaneseq  ;;  %vm285_vm3 = vcmask 15360   ;;  %s491_s9 = sshll.u32 %s704_s16, 7  ;;  %s186_s10 = scalar_lea.vmem [#allocation5], %s478_s30 }
  0x39   : > { %497 = vmatpush3.xpose.msk.msra.mxu0 %vm208_vm1, %v199_v6  ;;  %498 = vmatprep.mubr.msk.f32.mxu0 %vm660_vm2, %v659_v5  ;;  %v200_v14 = vld [vmem:[%s856_s2] sm:$0xf]  ;;  %v661_v26 = vmov 839922192   ;;  %s401_s11 = sshll.u32 %s186_s10, 4  ;;  %s810_s20 = scalar_lea.hbm %s857_s3, %s491_s9  ;;  %s812_s11 = int_to_ptr.vmem [resolvable:$true] %s401_s11 }
  0x3a   : > { %v193_v3 = vsel %vm191_vm0, %v189_v1, 0.0  ;;  %503 = vmatprep.mubr.msk.f32.mxu1 %vm660_vm2, %v659_v5  ;;  %v203_v8 = vand.u32 127, %v202_v7  ;;  %v205_v9 = vshrl.u32 %v202_v7, 7  ;;  %502 = vmatpush3.xpose.msk.msra.mxu1 %vm285_vm3, %v200_v14  ;;  %v377_v27 = vunpack.c.l.s4 %v661_v26  ;;  %s387_s22 = scalar_lea.sflag [#allocation4], %s788_s29  ;;  %s590_s26 = scalar_lea.vmem %s812_s11, 128 }
  0x3b   : > { %v194_v4 = vadd.f32 %v193_v3, %v192_v2  ;;  %p591_p6 = scmp.ne.s32.totalorder %s812_s11, %s590_s26  ;;  %p866_p11 = scmp.ne.s32.totalorder %s861_s24, 0 }
  0x3c   : > { %v206_v10 = vsub.s32 %v203_v8, %v205_v9  ;;  %v370_v23 = vsub.s32 0, %v205_v9  ;;  %v378_v28 = vunpack.c.0.s8 %v377_v27  ;;  %s662_s16 = smov [#allocation5]  }
  0x3d   : > { %195 = vadd.xlane.f32.xlu0 %v194_v4  ;;  %p592_p12 = pnand %p591_p6, %p866_p11  ;;  %s594_s27 = sshll.u32 %s662_s16, 4  ;;  %s595_s27 = int_to_ptr.vmem [resolvable:$false] %s594_s27 }
  0x3e   : > { %v381_v29 = vsub.s32 %v378_v28, %v205_v9  ;;  %s596_s28 = scalar_lea.vmem %s595_s27, 256  ;;  %p597_p7 = scmp.lt.s32.totalorder %s812_s11, %s595_s27 }
  0x3f   : > { %p593_p13 = pneg %p592_p12  ;;  %p598_p10 = scmp.lt.s32.totalorder %s596_s28, %s590_s26 }
  0x41   : > { %p599_p2 = por %p598_p10, %p597_p7 }
  0x43   : > { %p600_p4 = pnand %p599_p2, %p593_p13 }
  0xca   : > { %v196_v11 = vpop.xlane.xlu0 %195 }
  0xcb   : > { %v198_v12 = vmul.f32 0.00390625, %v196_v11 }
  0xcd   : > { %v207_v13 = vrot.slane %v198_v12, %v206_v10 }
  0xcf   : > { %499 = vmatmul.mubr.msk.f32.vlgmr.msra.gmra.mrb[0].mxu0 %vm208_vm1, %v207_v13 }
 0x1a2   : > { %v280_v15 = vpop.f32.mrb[0].mxu0 }
 0x1a3   : > { %v284_v16 = vmax.f32 %v280_v15, 0.0  ;;  %v500_v17 = vpop.f32.mrb[1].mxu0 }
 0x1a5   : > { %504 = vmatmul.mubr.msk.f32.vlgmr.msra.gmra.mrb[0].mxu1 %vm285_vm3, %v284_v16 }
 0x278   : > { %v358_v18 = vpop.f32.mrb[0].mxu1 }
 0x279   : > { %v484_v19 = vmul.f32 -1.442695, %v358_v18  ;;  %v505_v20 = vpop.f32.mrb[1].mxu1 }
 0x27b   : > { %556 = vpow2.f32 %v484_v19 }
 0x285   : > { %v557_v21 = vpop.eup %556 }
 0x286   : > { %v365_v22 = vadd.f32 1.0, %v557_v21 }
 0x288   : > { %558 = vrcp.f32 %v365_v22 }
 0x292   : > { %v559_v24 = vpop.eup %558 }
 0x293   : > { %v371_v25 = vrot.slane %v559_v24, %v370_v23 }
 0x295   : > { %373 = vbcast.lane.b32.xlu0 %v371_v25, 256 }
 0x307   : > { %v374_v30 = vpop.permute.xlu0 %373 }
 0x308   : > { %v382_v31 = vrot.slane %v374_v30, %v381_v29 }
 0x30a   : > { %v384_v32 = vmul.f32 %v382_v31, %v187_v0 }
 0x30c   : > { %385 = vst [vmem:[%s186_s10] sm:$0xff] %v384_v32 }
 0x30d   : > { %603 = shalt.err (!%p600_p4)
}
 0x30e   : > { %s604_s29 = scalar_lea.hbm %s810_s20, 128  ;;  %s608_s7 = scalar_lea.hbm %s857_s3, 256 }
 0x30f   : > { %p605_p5 = scmp.ne.s32.totalorder %s810_s20, %s604_s29  ;;  %p609_p0 = scmp.lt.u32.totalorder %s810_s20, %s857_s3 }
 0x310   : > { %p610_p1 = scmp.lt.u32.totalorder %s608_s7, %s604_s29  ;;  %p612_p6 = scmp.lt.u32.totalorder %s604_s29, %s810_s20 }
 0x311   : > { %p606_p8 = pnand %p605_p5, %p866_p11 }
 0x312   : > { %p611_p3 = por %p610_p1, %p609_p0 }
 0x313   : > { %p607_p9 = pneg %p606_p8 }
 0x314   : > { %p613_p12 = por %p612_p6, %p611_p3 }
 0x316   : > { %p614_p13 = pnand %p613_p12, %p607_p9 }
 0x318   : > { %617 = shalt.err (!%p614_p13)
}
 0x319   : > { %508 = dma.vmem_to_hbm [thread:$0]  (%p866_p11), %s812_s11, 128, %s810_s20, %s387_s22  }
 0x31a PF: > { %s413_s23 = sand.u32 1, %s644_s12   ;;  %p867_p7 = scmp.ne.s32.totalorder %s862_s25, 0 }
 0x31b   : > { %p868_p10 = scmp.ge.s32.totalorder %s656_s15, 2  ;;  %s414_s8 = scalar_lea.sflag [#allocation4], %s413_s23 }
 0x31d   : > { %p515_p2 = pnand %p868_p10, %p867_p7 }
 0x31f   : > { %639 = dma.done.wait (!%p515_p2), %s414_s8, 128  }
 0x320   : > { %641 = vsyncadd (!%p515_p2), %s414_s8, 4294967168  ;;  %p16_p4 = scmp.ge.s32.totalorder %s708_s18, 4   ;;  %s869_s12 = smov %s648_s13 }
 0x321   : > { %s870_s13 = smov %s652_s14  ;;  %s871_s14 = smov %s720_s21 }
 0x322   : > { %s872_s15 = smov %s708_s18  ;;  %18 = sbr.rel (!%p16_p4) target bundleno = 5 (0x5), region = 77 }
 0x329   :  { %419 = vsyncpa [#allocation3], 1 }
 0x32a   :  { %421 = vsyncpa [#allocation3 + $0x1], 1 }
 0x32b   :  { %422 = vsyncpa [#allocation4], 1 }
 0x32c   :  { %424 = vsyncpa [#allocation4 + $0x1], 1 }

</bundles_post_ra>
